<compile_context>
chip_gen: v7x
topology: tpu7x:2x2x1
jax: 0.10.0
libtpu: 0.0.40
codegen_flags: <defaults>
</compile_context>

<pallas_src>
import functools

import jax
import jax.numpy as jnp
from jax.experimental import pallas as pl
from jax.experimental.pallas import tpu as pltpu


def vae_encoder_kernel(x_ref, noise_ref, w1_ref, b1_ref, w2_ref, b2_ref,
                       wh_ref, bh_ref, out_ref, *, enc_dim):
    x = x_ref[...]

    # encoder_head: Linear -> ReLU -> Linear -> ReLU   (w3 folded into heads)
    h = jnp.dot(x, w1_ref[...], preferred_element_type=jnp.float32) + b1_ref[...]
    h = jnp.maximum(h, 0.0)
    h = jnp.dot(h, w2_ref[...], preferred_element_type=jnp.float32) + b2_ref[...]
    h = jnp.maximum(h, 0.0)

    # fused heads: single matmul producing [sigma_logits | mean_logits]
    heads = jnp.dot(h, wh_ref[...], preferred_element_type=jnp.float32) + bh_ref[...]
    heads = jax.nn.sigmoid(heads)
    sigma = heads[:, :enc_dim]
    mean = heads[:, enc_dim:]

    # reparameterization: encoded = mean + sigma * N(0, 1)
    enc = mean + sigma * noise_ref[...]

    # single lane-contiguous packed store: [enc | sigma | mean]
    out_ref[...] = jnp.concatenate([enc, sigma, mean], axis=-1).astype(out_ref.dtype)


def variational_encoder_forward(x, params, noise, *, block_b=None):
    """x: [B, in_shape] f32. params: dict of pre-transposed weights/biases.
    noise: [B, enc_dim] f32. Returns (encoded, sigma, mean), each [B, enc_dim]."""
    B, in_shape = x.shape
    enc_dim = params["wm"].shape[1]

    # Fold w3/b3 into a single concatenated heads weight (exact algebra: no
    # nonlinearity between w3 and the heads).
    w_heads = jnp.concatenate(
        [params["w3"] @ params["ws"], params["w3"] @ params["wm"]], axis=1)
    b_heads = jnp.concatenate(
        [params["b3"] @ params["ws"] + params["bs"],
         params["b3"] @ params["wm"] + params["bm"]], axis=1)

    # Batch tile size: large enough to amortize per-step overhead, small
    # enough that a double-buffered tile fits v7x's (64 MiB) VMEM easily.
    if block_b is None:
        block_b = min(B, 1024)
    block_b = max(1, min(block_b, B))
    block_b = ((block_b + 7) // 8) * 8          # sublane-aligned
    num_tiles = pl.cdiv(B, block_b)
    b_pad = num_tiles * block_b

    if b_pad != B:
        pad = b_pad - B
        x = jnp.pad(x, ((0, pad), (0, 0)))
        noise = jnp.pad(noise, ((0, pad), (0, 0)))

    args = (
        x, noise,
        params["w1"], params["b1"],
        params["w2"], params["b2"],
        w_heads, b_heads,
    )

    in_specs = [
        # batch-tiled, double-buffered streams
        pl.BlockSpec((block_b, in_shape), lambda i: (i, 0)),
        pl.BlockSpec((block_b, enc_dim), lambda i: (i, 0)),
        # tiny weights / biases stay resident (full-array blocks)
        pl.BlockSpec((in_shape, 4), lambda i: (0, 0)),
        pl.BlockSpec((1, 4), lambda i: (0, 0)),
        pl.BlockSpec((4, 4), lambda i: (0, 0)),
        pl.BlockSpec((1, 4), lambda i: (0, 0)),
        pl.BlockSpec((4, 2 * enc_dim), lambda i: (0, 0)),
        pl.BlockSpec((1, 2 * enc_dim), lambda i: (0, 0)),
    ]
    out_specs = pl.BlockSpec((block_b, 3 * enc_dim), lambda i: (i, 0))
    out_shape = jax.ShapeDtypeStruct((b_pad, 3 * enc_dim), jnp.float32)

    flops = 2 * b_pad * (in_shape * 4 + 4 * 4 + 4 * 2 * enc_dim)
    bytes_accessed = 4 * (
        b_pad * in_shape                 # x
        + b_pad * enc_dim                # noise
        + in_shape * 4 + 4 * 4 + 4 * 2 * enc_dim + 4 + 4 + 2 * enc_dim  # weights
        + b_pad * 3 * enc_dim            # packed output
    )
    cost = pl.CostEstimate(
        flops=flops,
        transcendentals=b_pad * 2 * enc_dim,   # sigmoids
        bytes_accessed=bytes_accessed,
    )

    packed = pl.pallas_call(
        functools.partial(vae_encoder_kernel, enc_dim=enc_dim),
        out_shape=out_shape,
        grid=(num_tiles,),
        in_specs=in_specs,
        out_specs=out_specs,
        compiler_params=pltpu.CompilerParams(
            dimension_semantics=("parallel",)),
        cost_estimate=cost,
    )(*args)

    packed = packed[:B]
    enc = packed[:, :enc_dim]
    sigma = packed[:, enc_dim:2 * enc_dim]
    mean = packed[:, 2 * enc_dim:]
    return enc, sigma, mean


def init_params(key, in_shape, encoded_space_dim):
    """Deterministic synthetic parameters with PyTorch nn.Linear shapes
    (stored here pre-transposed: W is [in, out], b is [1, out])."""
    dims = [
        ("w1", "b1", in_shape, 4),
        ("w2", "b2", 4, 4),
        ("w3", "b3", 4, 4),
        ("ws", "bs", 4, encoded_space_dim),
        ("wm", "bm", 4, encoded_space_dim),
    ]
    params = {}
    for wname, bname, fan_in, fan_out in dims:
        key, kw, kb = jax.random.split(key, 3)
        bound = 1.0 / jnp.sqrt(fan_in)
        params[wname] = jax.random.uniform(
            kw, (fan_in, fan_out), jnp.float32, -bound, bound)
        params[bname] = jax.random.uniform(
            kb, (1, fan_out), jnp.float32, -bound, bound)
    return params


def reference_forward(x, params, noise):
    h = jnp.maximum(x @ params["w1"] + params["b1"], 0.0)
    h = jnp.maximum(h @ params["w2"] + params["b2"], 0.0)
    h = h @ params["w3"] + params["b3"]
    sigma = jax.nn.sigmoid(h @ params["ws"] + params["bs"])
    mean = jax.nn.sigmoid(h @ params["wm"] + params["bm"])
    return mean + sigma * noise, sigma, mean


if __name__ == "__main__":
    B, IN_SHAPE, ENC_DIM = 16, 16, 4

    key = jax.random.PRNGKey(0)
    k_x, k_p, k_n = jax.random.split(key, 3)

    x = jax.random.normal(k_x, (B, IN_SHAPE), jnp.float32)
    params = init_params(k_p, IN_SHAPE, ENC_DIM)
    noise = jax.random.normal(k_n, (B, ENC_DIM), jnp.float32)

    # block_b=8 -> a 2-step batch grid, exercising the tiled/parallel path.
    enc, sigma, mean = variational_encoder_forward(x, params, noise, block_b=8)
    jax.block_until_ready((enc, sigma, mean))

    enc_ref, sigma_ref, mean_ref = reference_forward(x, params, noise)
    assert jnp.allclose(enc, enc_ref, atol=1e-5), "encoded mismatch"
    assert jnp.allclose(sigma, sigma_ref, atol=1e-5), "sigma mismatch"
    assert jnp.allclose(mean, mean_ref, atol=1e-5), "mean mismatch"

    print("KERNEL_OK")
</pallas_src>

<mosaic_0001>
module attributes {stable_mosaic.version = 11 : i64} {
  func.func @vae_encoder_kernel(%arg0: i32, %arg1: memref<8x16xf32, #tpu.memory_space<vmem>>, %arg2: memref<8x4xf32, #tpu.memory_space<vmem>>, %arg3: memref<16x4xf32, #tpu.memory_space<vmem>>, %arg4: memref<1x4xf32, #tpu.memory_space<vmem>>, %arg5: memref<4x4xf32, #tpu.memory_space<vmem>>, %arg6: memref<1x4xf32, #tpu.memory_space<vmem>>, %arg7: memref<4x8xf32, #tpu.memory_space<vmem>>, %arg8: memref<1x8xf32, #tpu.memory_space<vmem>>, %arg9: memref<8x12xf32, #tpu.memory_space<vmem>>) attributes {dimension_semantics = [#tpu.dimension_semantics<parallel>], iteration_bounds = array<i64: 2>, scalar_prefetch = 0 : i64, scratch_operands = 0 : i64, tpu.core_type = #tpu.core_type<tc>, window_params = [{transform_indices = @transform_0, window_bounds = array<i64: 8, 16>}, {transform_indices = @transform_1, window_bounds = array<i64: 8, 4>}, {pipeline_mode = #tpu.pipeline_mode<synchronous>, transform_indices = @transform_2, window_bounds = array<i64: 16, 4>}, {pipeline_mode = #tpu.pipeline_mode<synchronous>, transform_indices = @transform_3, window_bounds = array<i64: 1, 4>}, {pipeline_mode = #tpu.pipeline_mode<synchronous>, transform_indices = @transform_4, window_bounds = array<i64: 4, 4>}, {pipeline_mode = #tpu.pipeline_mode<synchronous>, transform_indices = @transform_5, window_bounds = array<i64: 1, 4>}, {pipeline_mode = #tpu.pipeline_mode<synchronous>, transform_indices = @transform_6, window_bounds = array<i64: 4, 8>}, {pipeline_mode = #tpu.pipeline_mode<synchronous>, transform_indices = @transform_7, window_bounds = array<i64: 1, 8>}, {transform_indices = @transform_8, window_bounds = array<i64: 8, 12>}]} {
    %c0 = arith.constant 0 : index
    %c0_0 = arith.constant 0 : index
    %0 = vector.load %arg1[%c0, %c0_0] : memref<8x16xf32, #tpu.memory_space<vmem>>, vector<8x16xf32>
    %c0_1 = arith.constant 0 : index
    %c0_2 = arith.constant 0 : index
    %1 = vector.load %arg3[%c0_1, %c0_2] : memref<16x4xf32, #tpu.memory_space<vmem>>, vector<16x4xf32>
    %cst = arith.constant dense<0.000000e+00> : vector<8x4xf32>
    %2 = tpu.matmul %0, %1, %cst {dimension_numbers = #tpu.dot_dimension_numbers<[1], [0], [0], [1], [0, 0, 1, 1], [], []>} : vector<8x16xf32>, vector<16x4xf32>, vector<8x4xf32> -> vector<8x4xf32>
    %c0_3 = arith.constant 0 : index
    %c0_4 = arith.constant 0 : index
    %3 = vector.load %arg4[%c0_3, %c0_4] : memref<1x4xf32, #tpu.memory_space<vmem>>, vector<1x4xf32>
    %4 = vector.broadcast %3 : vector<1x4xf32> to vector<8x4xf32>
    %5 = arith.addf %2, %4 : vector<8x4xf32>
    %cst_5 = arith.constant 0.000000e+00 : f32
    %6 = vector.broadcast %cst_5 : f32 to vector<8x4xf32>
    %7 = arith.maximumf %5, %6 : vector<8x4xf32>
    %c0_6 = arith.constant 0 : index
    %c0_7 = arith.constant 0 : index
    %8 = vector.load %arg5[%c0_6, %c0_7] : memref<4x4xf32, #tpu.memory_space<vmem>>, vector<4x4xf32>
    %cst_8 = arith.constant dense<0.000000e+00> : vector<8x4xf32>
    %9 = tpu.matmul %7, %8, %cst_8 {dimension_numbers = #tpu.dot_dimension_numbers<[1], [0], [0], [1], [0, 0, 1, 1], [], []>} : vector<8x4xf32>, vector<4x4xf32>, vector<8x4xf32> -> vector<8x4xf32>
    %c0_9 = arith.constant 0 : index
    %c0_10 = arith.constant 0 : index
    %10 = vector.load %arg6[%c0_9, %c0_10] : memref<1x4xf32, #tpu.memory_space<vmem>>, vector<1x4xf32>
    %11 = vector.broadcast %10 : vector<1x4xf32> to vector<8x4xf32>
    %12 = arith.addf %9, %11 : vector<8x4xf32>
    %cst_11 = arith.constant 0.000000e+00 : f32
    %13 = vector.broadcast %cst_11 : f32 to vector<8x4xf32>
    %14 = arith.maximumf %12, %13 : vector<8x4xf32>
    %c0_12 = arith.constant 0 : index
    %c0_13 = arith.constant 0 : index
    %15 = vector.load %arg7[%c0_12, %c0_13] : memref<4x8xf32, #tpu.memory_space<vmem>>, vector<4x8xf32>
    %cst_14 = arith.constant dense<0.000000e+00> : vector<8x8xf32>
    %16 = tpu.matmul %14, %15, %cst_14 {dimension_numbers = #tpu.dot_dimension_numbers<[1], [0], [0], [1], [0, 0, 1, 1], [], []>} : vector<8x4xf32>, vector<4x8xf32>, vector<8x8xf32> -> vector<8x8xf32>
    %c0_15 = arith.constant 0 : index
    %c0_16 = arith.constant 0 : index
    %17 = vector.load %arg8[%c0_15, %c0_16] : memref<1x8xf32, #tpu.memory_space<vmem>>, vector<1x8xf32>
    %18 = vector.broadcast %17 : vector<1x8xf32> to vector<8x8xf32>
    %19 = arith.addf %16, %18 : vector<8x8xf32>
    %20 = arith.negf %19 : vector<8x8xf32>
    %21 = math.exp %20 : vector<8x8xf32>
    %cst_17 = arith.constant 1.000000e+00 : f32
    %22 = vector.broadcast %cst_17 : f32 to vector<8x8xf32>
    %23 = arith.addf %22, %21 : vector<8x8xf32>
    %24 = arith.divf %22, %23 : vector<8x8xf32>
    %25 = vector.extract_strided_slice %24 {offsets = [0, 0], sizes = [8, 4], strides = [1, 1]} : vector<8x8xf32> to vector<8x4xf32>
    %26 = vector.extract_strided_slice %24 {offsets = [0, 4], sizes = [8, 4], strides = [1, 1]} : vector<8x8xf32> to vector<8x4xf32>
    %c0_18 = arith.constant 0 : index
    %c0_19 = arith.constant 0 : index
    %27 = vector.load %arg2[%c0_18, %c0_19] : memref<8x4xf32, #tpu.memory_space<vmem>>, vector<8x4xf32>
    %28 = arith.mulf %25, %27 : vector<8x4xf32>
    %29 = arith.addf %26, %28 : vector<8x4xf32>
    %30 = tpu.concatenate %29, %25, %26 in 1 : vector<8x4xf32>, vector<8x4xf32>, vector<8x4xf32> -> vector<8x12xf32>
    %c0_20 = arith.constant 0 : index
    %c0_21 = arith.constant 0 : index
    %31 = vector.load %arg9[%c0_20, %c0_21] : memref<8x12xf32, #tpu.memory_space<vmem>>, vector<8x12xf32>
    tpu.vector_store %arg9[%c0_20, %c0_21], %30 {strides = array<i32>} : memref<8x12xf32, #tpu.memory_space<vmem>>, vector<8x12xf32>,
    return
  }
  func.func @transform_0(%arg0: i32) -> (i32, i32) {
    %c0_i32 = arith.constant 0 : i32
    %c0_i32_0 = arith.constant 0 : i32
    return %arg0, %c0_i32 : i32, i32
  }
  func.func @transform_1(%arg0: i32) -> (i32, i32) {
    %c0_i32 = arith.constant 0 : i32
    %c0_i32_0 = arith.constant 0 : i32
    return %arg0, %c0_i32 : i32, i32
  }
  func.func @transform_2(%arg0: i32) -> (i32, i32) {
    %c0_i32 = arith.constant 0 : i32
    %c0_i32_0 = arith.constant 0 : i32
    %c0_i32_1 = arith.constant 0 : i32
    return %c0_i32, %c0_i32_0 : i32, i32
  }
  func.func @transform_3(%arg0: i32) -> (i32, i32) {
    %c0_i32 = arith.constant 0 : i32
    %c0_i32_0 = arith.constant 0 : i32
    %c0_i32_1 = arith.constant 0 : i32
    return %c0_i32, %c0_i32_0 : i32, i32
  }
  func.func @transform_4(%arg0: i32) -> (i32, i32) {
    %c0_i32 = arith.constant 0 : i32
    %c0_i32_0 = arith.constant 0 : i32
    %c0_i32_1 = arith.constant 0 : i32
    return %c0_i32, %c0_i32_0 : i32, i32
  }
  func.func @transform_5(%arg0: i32) -> (i32, i32) {
    %c0_i32 = arith.constant 0 : i32
    %c0_i32_0 = arith.constant 0 : i32
    %c0_i32_1 = arith.constant 0 : i32
    return %c0_i32, %c0_i32_0 : i32, i32
  }
  func.func @transform_6(%arg0: i32) -> (i32, i32) {
    %c0_i32 = arith.constant 0 : i32
    %c0_i32_0 = arith.constant 0 : i32
    %c0_i32_1 = arith.constant 0 : i32
    return %c0_i32, %c0_i32_0 : i32, i32
  }
  func.func @transform_7(%arg0: i32) -> (i32, i32) {
    %c0_i32 = arith.constant 0 : i32
    %c0_i32_0 = arith.constant 0 : i32
    %c0_i32_1 = arith.constant 0 : i32
    return %c0_i32, %c0_i32_0 : i32, i32
  }
  func.func @transform_8(%arg0: i32) -> (i32, i32) {
    %c0_i32 = arith.constant 0 : i32
    %c0_i32_0 = arith.constant 0 : i32
    return %arg0, %c0_i32 : i32, i32
  }
}

</mosaic_0001>

<bundles_post_ra>
// kernel: tpu_custom_call.1
= control target key start
LH: loop header
LB: loop body
LE: loop exit
PB: predicated region body
PF: predicated region fallthrough
CT: control target
= control target key end

     0   :  { %13 = vsyncpa [#allocation3], 0  ;;  %s1032_s0 = inlined_call_operand.vmem [shape: f32[16,16], index: 0, kind: input, shape index: {}]   ;;  %s1033_s1 = inlined_call_operand.vmem [shape: f32[16,4], index: 1, kind: input, shape index: {}]   ;;  %s1034_s2 = inlined_call_operand.vmem [shape: f32[16,4], index: 2, kind: input, shape index: {}]   ;;  %s1035_s3 = inlined_call_operand.vmem [shape: f32[1,4], index: 3, kind: input, shape index: {}]   ;;  %s1036_s4 = inlined_call_operand.vmem [shape: f32[4,4], index: 4, kind: input, shape index: {}]   ;;  %s1037_s5 = inlined_call_operand.vmem [shape: f32[1,4], index: 5, kind: input, shape index: {}]   ;;  %s1038_s6 = inlined_call_operand.vmem [shape: f32[4,8], index: 6, kind: input, shape index: {}]   ;;  %s1039_s7 = inlined_call_operand.vmem [shape: f32[1,8], index: 7, kind: input, shape index: {}]   ;;  %s1040_s8 = inlined_call_operand.hbm [shape: f32[16,12], index: 8, kind: output, shape index: {}]  }
   0x1   :  { %15 = vsyncpa [#allocation3 + $0x1], 0  ;;  %s895_s27 = smov 0   ;;  %s897_s28 = smov 0  }
   0x2   :  { %s899_s29 = smov 0   ;;  %s901_s30 = smov 0  }
   0x3 LB: > { %s916_s9 = sadd.s32 4294967295, %s842_s30   ;;  %s685_s10 = sadd.s32 4294967294, %s842_s30   ;;  %s842_s30 = sphi %s901_s30, %s1046_s30   ;;  %s838_s29 = sphi %s899_s29, %s1045_s29   ;;  %s834_s28 = sphi %s897_s28, %s1044_s28   ;;  %s830_s27 = sphi %s895_s27, %s1043_s27  }
   0x4   : > { %s920_s11 = sadd.s32 1, %s842_s30   ;;  %s206_s12 = sadd.s32 1, %s838_s29 }
   0x5   : > { %s203_s13 = ssub.s32 %s842_s30, %s920_s11  ;;  %p216_p0 = scmp.ne.s32.totalorder %s838_s29, %s834_s28 }
   0x6   : > { %p204_p1 = scmp.eq.s32.totalorder %s203_s13, 0  ;;  %p217_p2 = scmp.eq.s32.totalorder %s916_s9, 1 }
   0x7   : > { %p222_p3 = scmp.ne.s32.totalorder %s834_s28, %s830_s27  ;;  %p223_p4 = scmp.eq.s32.totalorder %s685_s10, 1 }
   0x8   : > { %s931_s14 = scalar_select %p204_p1, %s838_s29, %s206_s12  }
   0x9   : > { %p933_p5 = por %p217_p2, %p216_p0  ;;  %p937_p6 = por %p223_p4, %p222_p3 }
   0xa   : > { %p688_p7 = scmp.ge.s32.totalorder %s842_s30, 1  ;;  %p273_p8 = scmp.lt.s32.totalorder %s842_s30, 3 }
   0xc   : > { %p274_p9 = pnand %p688_p7, %p273_p8 }
   0xd   : > { %v319_v0 = vld [vmem:[%s1034_s2] sm:$0xff] (!%p274_p9)  ;;  %v320_v1 = vld [vmem:[%s1034_s2 + $0x8] sm:$0xff] (!%p274_p9)  ;;  %p310_p10 = scmp.lt.s32.totalorder (!%p274_p9), %s916_s9, 1  ;;  %v844_v2 = vmov (!%p274_p9), 0.0|0.0   ;;  %vm845_vm0 = vmmov (!%p274_p9), 0   ;;  %v846_v4 = vmov (!%p274_p9), 0.0  }
   0xe   : > { %277 = sbr.rel (%p274_p9) target bundleno = 948 (0x3b4), region = 52  ;;  %729 = vmatprep.subr.bf16.mxu0 (!%p274_p9), %v844_v2  ;;  %v730_v3 = vpack.c.bf16 (!%p274_p9), %v320_v1, %v319_v0  ;;  %716 = vmatprep.mubr.msk.f32.mxu0 (!%p274_p9), %vm845_vm0, %v846_v4  ;;  %vm328_vm1 = vcmask (!%p274_p9), 130048   ;;  %v403_v6 = vld [vmem:[%s1036_s4] sm:$0xf] (!%p274_p9)  ;;  %vm415_vm2 = vcmask (!%p274_p9), 1043456   ;;  %vm411_vm3 = vcmask (!%p274_p9), 31744  }
   0xf   : > { %719 = vmatprep.subr.mxu1 (!%p274_p9), %v846_v4  ;;  %721 = vmatprep.mubr.msk.f32.mxu1 (!%p274_p9), %vm845_vm0, %v846_v4  ;;  %v692_v7 = vld [vmem:[%s1035_s3] ss:$0 sm:$0xff] (!%p274_p9)  ;;  %s847_s12 = smov (!%p274_p9), 4   ;;  %s848_s13 = smov (!%p274_p9), 124   ;;  %vm596_vm4 = vcmask (!%p274_p9), 64512   ;;  %vm598_vm5 = vcmask (!%p274_p9), 97280  }
  0x10   : > { %731 = vmatpush3.bf16.msra.mxu0 (!%p274_p9), %v730_v3  ;;  %720 = vmatpush3.msk.msra.mxu1 (!%p274_p9), %vm415_vm2, %v403_v6  ;;  %v490_v12 = vld [vmem:[%s1038_s6] sm:$0xf] (!%p274_p9)  ;;  %s307_s17 = sand.u32 (!%p274_p9), 1, %s834_s28   ;;  %s702_s19 = sshll.u32 (!%p274_p9), %s916_s9, 7 }
  0x11   : > { %724 = vmatprep.subr.mxu1 (!%p274_p9), %v846_v4  ;;  %v694_v13 = vld [vmem:[%s1037_s5] ss:$0 sm:$0xff] (!%p274_p9)  ;;  %s689_s18 = sshll.u32 (!%p274_p9), %s307_s17, 3  ;;  %s990_s24 = scalar_lea.hbm (!%p274_p9), %s1040_s8, %s702_s19 }
  0x12   : > { %v697_v18 = vld [vmem:[%s1039_s7] ss:$0 sm:$0xff] (!%p274_p9)  ;;  %s309_s20 = scalar_lea.vmem (!%p274_p9), [#allocation2], %s689_s18  ;;  %s849_s26 = smov (!%p274_p9), [#allocation2]  }
  0x15   : > { %s952_s21 = scalar_select %p310_p10, %s916_s9, 1 }
  0x16   : > { %s601_s9 = scalar_lea.sflag [#allocation3], %s307_s17 }
  0x17   : > { %s690_s22 = sshll.u32 %s952_s21, 3  ;;  %s614_s21 = sshll.u32 %s309_s20, 4  ;;  %s992_s21 = int_to_ptr.vmem [resolvable:$true] %s614_s21 }
  0x18   : > { %s313_s25 = scalar_lea.vmem %s1032_s0, %s690_s22  ;;  %s317_s10 = scalar_lea.vmem %s1033_s1, %s690_s22 }
  0x19   : > { %v318_v5 = vld [vmem:[%s313_s25] sm:$0xff]  ;;  %s780_s25 = scalar_lea.vmem %s992_s21, 128 }
  0x1a   : > { %717 = vmatmul.mubr.msk.f32.vlgmr.msra.gmra.mrb[0].mxu0 %vm328_vm1, %v318_v5  ;;  %v580_v25 = vld [vmem:[%s317_s10] sm:$0xff]  ;;  %p781_p11 = scmp.ne.s32.totalorder %s992_s21, %s780_s25  ;;  %s784_s10 = sshll.u32 %s849_s26, 4  ;;  %s785_s10 = int_to_ptr.vmem [resolvable:$false] %s784_s10 }
  0x1b   : > { %p787_p0 = scmp.lt.s32.totalorder %s992_s21, %s785_s10 }
  0x1c   : > { %p782_p12 = pnand %p781_p11, %p933_p5 }
  0x1e   : > { %p783_p13 = pneg %p782_p12 }
  0xed   : > { %v398_v8 = vpop.f32.mrb[0].mxu0 }
  0xee   : > { %v399_v9 = vadd.f32 %v692_v7, %v398_v8  ;;  %v718_v10 = vpop.f32.mrb[1].mxu0 }
  0xf0   : > { %v402_v11 = vmax.f32 %v399_v9, 0.0 }
  0xf2   : > { %722 = vmatmul.mubr.msk.f32.vlgmr.msra.gmra.mrb[0].mxu1 %vm411_vm3, %v402_v11 }
  0xf3   : > { %726 = vmatprep.mubr.msk.f32.mxu1 %vm845_vm0, %v846_v4  ;;  %725 = vmatpush3.msk.msra.mxu1 %vm415_vm2, %v490_v12 }
 0x1c5   : > { %v485_v14 = vpop.f32.mrb[0].mxu1 }
 0x1c6   : > { %v486_v15 = vadd.f32 %v694_v13, %v485_v14  ;;  %v723_v16 = vpop.f32.mrb[1].mxu1 }
 0x1c8   : > { %v489_v17 = vmax.f32 %v486_v15, 0.0 }
 0x1ca   : > { %727 = vmatmul.mubr.msk.f32.vlgmr.msra.gmra.mrb[2].mxu1 %vm411_vm3, %v489_v17 }
 0x29d   : > { %v570_v19 = vpop.f32.mrb[2].mxu1 }
 0x29e   : > { %v571_v20 = vadd.f32 %v697_v18, %v570_v19  ;;  %v728_v21 = vpop.f32.mrb[3].mxu1 }
 0x2a0   : > { %v700_v22 = vmul.f32 -1.442695, %v571_v20 }
 0x2a2   : > { %776 = vpow2.f32 %v700_v22 }
 0x2ac   : > { %v777_v23 = vpop.eup %776 }
 0x2ad   : > { %v577_v24 = vadd.f32 1.0, %v777_v23 }
 0x2af   : > { %778 = vrcp.f32 %v577_v24 }
 0x2b9   : > { %v779_v26 = vpop.eup %778 }
 0x2ba   : > { %592 = vrot.lane.b32.xlu1 %v779_v26, %s847_s12  ;;  %v581_v27 = vmul.f32 %v779_v26, %v580_v25 }
 0x2bc   : > { %583 = vrot.lane.b32.xlu0 %v581_v27, %s847_s12  ;;  %s786_s12 = scalar_lea.vmem %s785_s10, 256 }
 0x2bd   : > { %p788_p1 = scmp.lt.s32.totalorder %s786_s12, %s780_s25 }
 0x2bf   : > { %p789_p2 = por %p788_p1, %p787_p0 }
 0x2c1   : > { %p790_p3 = pnand %p789_p2, %p783_p13 }
 0x32c   : > { %v593_v30 = vpop.permute.xlu1 %592 }
 0x32e   : > { %v584_v28 = vpop.permute.xlu0 %583 }
 0x32f   : > { %v586_v29 = vadd.f32 %v779_v26, %v584_v28 }
 0x331   : > { %588 = vrot.lane.b32.xlu0 %v586_v29, %s848_s13 }
 0x3a3   : > { %v589_v31 = vpop.permute.xlu0 %588 }
 0x3a4   : > { %v595_v32 = vsel %vm411_vm3, %v589_v31, %v593_v30 }
 0x3a5   : > { %v597_v33 = vsel %vm596_vm4, %v595_v32, %v593_v30 }
 0x3a6   : > { %599 = vst.msk [vmem:[%s309_s20] sm:$0xff] %vm598_vm5, %v597_v33 }
 0x3a7   : > { %793 = shalt.err (!%p790_p3)
}
 0x3a8   : > { %s794_s13 = scalar_lea.hbm %s990_s24, 128  ;;  %s798_s19 = scalar_lea.hbm %s1040_s8, 256 }
 0x3a9   : > { %p795_p4 = scmp.ne.s32.totalorder %s990_s24, %s794_s13  ;;  %p799_p9 = scmp.lt.u32.totalorder %s990_s24, %s1040_s8 }
 0x3aa   : > { %p800_p10 = scmp.lt.u32.totalorder %s798_s19, %s794_s13  ;;  %p802_p12 = scmp.lt.u32.totalorder %s794_s13, %s990_s24 }
 0x3ab   : > { %p796_p7 = pnand %p795_p4, %p933_p5 }
 0x3ac   : > { %p801_p11 = por %p800_p10, %p799_p9 }
 0x3ad   : > { %p797_p8 = pneg %p796_p7 }
 0x3ae   : > { %p803_p13 = por %p802_p12, %p801_p11 }
 0x3b0   : > { %p804_p0 = pnand %p803_p13, %p797_p8 }
 0x3b2   : > { %807 = shalt.err (!%p804_p0)
}
 0x3b3   : > { %732 = dma.vmem_to_hbm [thread:$0]  (%p933_p5), %s992_s21, 128, %s990_s24, %s601_s9  }
 0x3b4 PF: > { %p738_p1 = scmp.ge.s32.totalorder %s842_s30, 2  ;;  %s626_s23 = sand.u32 1, %s830_s27  }
 0x3b5   : > { %s627_s25 = scalar_lea.sflag [#allocation3], %s626_s23 }
 0x3b6   : > { %p735_p2 = pnand %p738_p1, %p937_p6 }
 0x3b8   : > { %825 = dma.done.wait (!%p735_p2), %s627_s25, 128  }
 0x3b9   : > { %827 = vsyncadd (!%p735_p2), %s627_s25, 4294967168  ;;  %p18_p3 = scmp.ge.s32.totalorder %s920_s11, 4   ;;  %s1043_s27 = smov %s834_s28 }
 0x3ba   : > { %s1044_s28 = smov %s838_s29  ;;  %s1045_s29 = smov %s931_s14 }
 0x3bb   : > { %s1046_s30 = smov %s920_s11  ;;  %20 = sbr.rel (!%p18_p3) target bundleno = 3 (0x3), region = 90 }
 0x3c2   :  { %632 = vsyncpa [#allocation3], 1 }
 0x3c3   :  { %634 = vsyncpa [#allocation3 + $0x1], 1 }

</bundles_post_ra>
